<compile_context>
chip_gen: v6e
topology: v6e:2x2x1
jax: 0.10.0
libtpu: 0.0.40
codegen_flags: <defaults>
</compile_context>

<pallas_src>
import jax
import jax.numpy as jnp
from jax.experimental import pallas as pl
from jax.experimental.pallas import tpu as pltpu


def _hard_sigmoid_kernel(x_ref, o_ref):
    x = x_ref[...]
    # y = clamp((x + 1) / 2, 0, 1); mul-by-0.5 instead of div (VPU-friendly).
    o_ref[...] = jnp.clip((x + 1.0) * 0.5, 0.0, 1.0)


_VMEM_LIMIT_BYTES = 32 * 1024 * 1024    # explicit scoped-VMEM limit (all gens OK)
_TARGET_BLOCK_BYTES = 4 * 1024 * 1024   # ~4 MiB block -> ~4x block = 16 MiB < limit


def _run_2d(x2d: jax.Array, rows: int, lanes: int) -> jax.Array:
    dtype = x2d.dtype
    itemsize = jnp.dtype(dtype).itemsize
    # Rows per block: ~4 MiB, rounded down to a multiple of 16
    # (16 sublanes is safe for both f32 (8) and packed bf16 (16) layouts).
    tm_target = max(16, (_TARGET_BLOCK_BYTES // (lanes * itemsize)) // 16 * 16)
    tm = min(tm_target, rows)  # if tm == rows the block spans the full dim
    grid = (pl.cdiv(rows, tm),)

    n = rows * lanes
    cost = pl.CostEstimate(
        flops=3 * n, transcendentals=0, bytes_accessed=2 * n * itemsize
    )

    return pl.pallas_call(
        _hard_sigmoid_kernel,
        out_shape=jax.ShapeDtypeStruct((rows, lanes), dtype),
        grid_spec=pltpu.PrefetchScalarGridSpec(
            num_scalar_prefetch=0,
            grid=grid,
            in_specs=[pl.BlockSpec((tm, lanes), lambda i: (i, 0))],
            out_specs=pl.BlockSpec((tm, lanes), lambda i: (i, 0)),
        ),
        compiler_params=pltpu.CompilerParams(
            dimension_semantics=("parallel",),
            vmem_limit_bytes=_VMEM_LIMIT_BYTES,
        ),
        cost_estimate=cost,
    )(x2d)


def hard_sigmoid(x: jax.Array) -> jax.Array:
    """Elementwise y = clamp((x + 1) / 2, 0, 1), matching the PyTorch module."""
    orig_shape = x.shape
    n = x.size

    # Fast path: pure reshape (no pad, no slice -> no extra HBM traffic).
    # Prefer the widest lane-dim that divides n exactly (lane-dense stores).
    for lanes in (4096, 2048, 1024, 512, 256, 128):
        if n % lanes == 0:
            rows = n // lanes
            out2d = _run_2d(x.reshape(rows, lanes), rows, lanes)
            return out2d.reshape(orig_shape)

    # Slow path (n not a multiple of 128): pad to 128 lanes, slice back.
    # Rarely hit; costs one extra pad + slice pass over HBM.
    lanes = 128
    n_pad = -(-n // lanes) * lanes
    x_flat = jnp.pad(jnp.ravel(x), (0, n_pad - n))
    rows = n_pad // lanes
    out2d = _run_2d(x_flat.reshape(rows, lanes), rows, lanes)
    return out2d.reshape(-1)[:n].reshape(orig_shape)


if __name__ == "__main__":
    key = jax.random.PRNGKey(0)

    # NCHW input like the PyTorch module would receive.
    x = jax.random.normal(key, (2, 4, 16, 16), dtype=jnp.float32) * 2.0
    y = hard_sigmoid(x)
    jax.block_until_ready(y)
    y_ref = jnp.clip((x + 1.0) / 2.0, 0.0, 1.0)
    assert y.shape == x.shape and y.dtype == x.dtype
    assert jnp.allclose(y, y_ref, atol=1e-6), "mismatch vs reference (fast path)"

    # Cover the non-divisible (pad/slice) path too.
    x2 = jax.random.normal(jax.random.PRNGKey(1), (3, 5, 7), dtype=jnp.float32) * 2.0
    y2 = hard_sigmoid(x2)
    jax.block_until_ready(y2)
    y2_ref = jnp.clip((x2 + 1.0) / 2.0, 0.0, 1.0)
    assert y2.shape == x2.shape and y2.dtype == x2.dtype
    assert jnp.allclose(y2, y2_ref, atol=1e-6), "mismatch vs reference (pad path)"

    print("KERNEL_OK")
</pallas_src>

<mosaic_0001>
module attributes {stable_mosaic.version = 11 : i64} {
  func.func @_hard_sigmoid_kernel(%arg0: i32, %arg1: memref<1x2048xf32, #tpu.memory_space<vmem>>, %arg2: memref<1x2048xf32, #tpu.memory_space<vmem>>) attributes {dimension_semantics = [#tpu.dimension_semantics<parallel>], iteration_bounds = array<i64: 1>, scalar_prefetch = 0 : i64, scratch_operands = 0 : i64, tpu.core_type = #tpu.core_type<tc>, window_params = [{transform_indices = @transform_0, window_bounds = array<i64: 1, 2048>}, {transform_indices = @transform_1, window_bounds = array<i64: 1, 2048>}]} {
    %c0 = arith.constant 0 : index
    %c0_0 = arith.constant 0 : index
    %0 = vector.load %arg1[%c0, %c0_0] : memref<1x2048xf32, #tpu.memory_space<vmem>>, vector<1x2048xf32>
    %cst = arith.constant 1.000000e+00 : f32
    %1 = vector.broadcast %cst : f32 to vector<1x2048xf32>
    %2 = arith.addf %0, %1 : vector<1x2048xf32>
    %cst_1 = arith.constant 5.000000e-01 : f32
    %3 = vector.broadcast %cst_1 : f32 to vector<1x2048xf32>
    %4 = arith.mulf %2, %3 : vector<1x2048xf32>
    %cst_2 = arith.constant 0.000000e+00 : f32
    %cst_3 = arith.constant 1.000000e+00 : f32
    %5 = vector.broadcast %cst_2 : f32 to vector<1x2048xf32>
    %6 = arith.maximumf %5, %4 : vector<1x2048xf32>
    %7 = vector.broadcast %cst_3 : f32 to vector<1x2048xf32>
    %8 = arith.minimumf %7, %6 : vector<1x2048xf32>
    %c0_4 = arith.constant 0 : index
    %c0_5 = arith.constant 0 : index
    %9 = vector.load %arg2[%c0_4, %c0_5] : memref<1x2048xf32, #tpu.memory_space<vmem>>, vector<1x2048xf32>
    tpu.vector_store %arg2[%c0_4, %c0_5], %8 {strides = array<i32>} : memref<1x2048xf32, #tpu.memory_space<vmem>>, vector<1x2048xf32>,
    return
  }
  func.func @transform_0(%arg0: i32) -> (i32, i32) {
    %c0_i32 = arith.constant 0 : i32
    %c0_i32_0 = arith.constant 0 : i32
    return %arg0, %c0_i32 : i32, i32
  }
  func.func @transform_1(%arg0: i32) -> (i32, i32) {
    %c0_i32 = arith.constant 0 : i32
    %c0_i32_0 = arith.constant 0 : i32
    return %arg0, %c0_i32 : i32, i32
  }
}

</mosaic_0001>

<bundles_post_ra>
// kernel: tpu_custom_call.1
= control target key start
LH: loop header
LB: loop body
LE: loop exit
PB: predicated region body
PF: predicated region fallthrough
CT: control target
= control target key end

     0   :  { %6 = vsyncpa [#allocation3], 0  ;;  %s112_s0 = inlined_call_operand.hbm [shape: f32[1,2048], index: 0, kind: input, shape index: {}]   ;;  %s113_s1 = inlined_call_operand.hbm [shape: f32[1,2048], index: 1, kind: output, shape index: {}]  }
   0x1   :  { %7 = vsyncpa [#allocation4], 0  ;;  %s94_s6 = smov [#allocation2]  }
   0x2   :  { %s14_s7 = sshll.u32 %s94_s6, 4  ;;  %s15_s7 = int_to_ptr.vmem [resolvable:$true] %s14_s7 }
   0x3   :  { %s58_s8 = scalar_lea.vmem %s15_s7, 256  ;;  %p63_p1 = scmp.lt.s32.totalorder %s15_s7, %s15_s7 }
   0x4   :  { %p59_p0 = scmp.ne.s32.totalorder %s15_s7, %s58_s8  ;;  %p64_p2 = scmp.lt.s32.totalorder %s58_s8, %s58_s8 }
   0x6   :  { %p65_p3 = por %p64_p2, %p63_p1 }
   0x8   :  { %p66_p4 = pnand %p65_p3, %p59_p0 }
   0xa   :  { %69 = shalt.err (!%p66_p4)
}
   0xb   :  { %17 = dma.hbm_to_vmem [thread:$0]  %s112_s0, 256, %s15_s7, [#allocation3]  }
   0xc   :  { %90 = dma.done.wait [#allocation3], 256  }
   0xd   :  { %91 = vsyncadd [#allocation3], 4294967040  ;;  %v21_v0 = vld [vmem:[#allocation2] sm:$0xff]  ;;  %v22_v1 = vld [vmem:[#allocation2 + $0x8] sm:$0xff]  ;;  %s95_s11 = smov [#allocation5]  }
   0xe   :  { %v23_v2 = vadd.f32 1.0, %v21_v0  ;;  %v24_v3 = vadd.f32 1.0, %v22_v1  ;;  %s39_s12 = sshll.u32 %s95_s11, 4  ;;  %s40_s12 = int_to_ptr.vmem [resolvable:$true] %s39_s12 }
   0xf   :  { %s70_s13 = scalar_lea.vmem %s40_s12, 256  ;;  %p75_p6 = scmp.lt.s32.totalorder %s40_s12, %s40_s12 }
  0x10   :  { %v25_v4 = vmul.f32 0.5, %v23_v2  ;;  %v26_v5 = vmul.f32 0.5, %v24_v3  ;;  %p71_p5 = scmp.ne.s32.totalorder %s40_s12, %s70_s13  ;;  %p76_p7 = scmp.lt.s32.totalorder %s70_s13, %s70_s13 }
  0x12   :  { %v27_v6 = vmax.f32 %v25_v4, 0.0  ;;  %v28_v7 = vmax.f32 %v26_v5, 0.0  ;;  %p77_p8 = por %p76_p7, %p75_p6 }
  0x14   :  { %v29_v8 = vmin.f32 %v27_v6, 1.0  ;;  %v30_v9 = vmin.f32 %v28_v7, 1.0  ;;  %p78_p9 = pnand %p77_p8, %p71_p5 }
  0x16   :  { %31 = vst [vmem:[#allocation5] sm:$0xff] %v29_v8  ;;  %32 = vst [vmem:[#allocation5 + $0x8] sm:$0xff] %v30_v9 }
  0x17   :  { %81 = shalt.err (!%p78_p9)
}
  0x18   :  { %42 = dma.vmem_to_hbm [thread:$0]  %s40_s12, 256, %s113_s1, [#allocation4]  }
  0x19   :  { %92 = dma.done.wait [#allocation4], 256  }
  0x1a   :  { %93 = vsyncadd [#allocation4], 4294967040 }
  0x1b   :  { %46 = vsyncpa [#allocation3], 1 }
  0x1c   :  { %47 = vsyncpa [#allocation4], 1 }

</bundles_post_ra>
